<compile_context>
chip_gen: v5e
topology: v5e:2x2
jax: 0.10.0
libtpu: 0.0.40
codegen_flags: <defaults>
</compile_context>

<pallas_src>
import jax
import jax.numpy as jnp
from jax.experimental import pallas as pl
from jax.experimental.pallas import tpu as pltpu


def lstm_fc_kernel(x_ref, wih_ref, whh_ref, b_ref, wfc_ref, bfc_ref, out_ref):
    # x_ref:   (T*B, D)   time-major input, flattened over (T, B)
    # wih_ref: (D, 4H)    W_ih^T
    # whh_ref: (H, 4H)    W_hh^T
    # b_ref:   (1, 4H)    b_ih + b_hh
    # wfc_ref: (1, H)     fc weight row
    # bfc_ref: (1, 1)     fc bias
    # out_ref: (B, 1)
    TB = x_ref.shape[0]
    H4 = wih_ref.shape[1]
    H = H4 // 4
    B = out_ref.shape[0]
    T = TB // B

    # (1) One MXU matmul projects ALL timesteps at once; bias folded in.
    #     Stays a live value (2 vregs at these shapes) — no VMEM round-trip.
    xg_all = (jnp.dot(x_ref[...], wih_ref[...],
                      preferred_element_type=jnp.float32)
              + b_ref[...])                                   # (T*B, 4H)

    whh = whh_ref[...]                                        # hoisted (H, 4H)

    def apply_gates(gates, c_prev):
        # gates: (B, 4H) pre-activation in [i, f, g, o] order.
        sg = jax.nn.sigmoid(gates)                   # one full-vreg EUP op
        i_g = sg[:, 0 * H:1 * H]
        f_g = sg[:, 1 * H:2 * H]
        o_g = sg[:, 3 * H:4 * H]
        g_g = jnp.tanh(gates[:, 2 * H:3 * H])        # tanh only on g slice
        c_new = f_g * c_prev + i_g * g_g
        h_new = o_g * jnp.tanh(c_new)
        return h_new, c_new

    # (2) Peeled t = 0: h0 = c0 = 0 => gates = xg[0], f*c term vanishes,
    #     no recurrence matmul.
    gates0 = xg_all[0:B, :]
    sg0 = jax.nn.sigmoid(gates0)
    i0 = sg0[:, 0 * H:1 * H]
    o0 = sg0[:, 3 * H:4 * H]
    g0 = jnp.tanh(gates0[:, 2 * H:3 * H])
    c = i0 * g0
    h = o0 * jnp.tanh(c)

    # (3) Remaining recurrence, statically unrolled; h/c live in registers,
    #     static slices of xg_all per step, one MXU matmul per step.
    for t in range(1, T):
        gates = xg_all[t * B:(t + 1) * B, :] + jnp.dot(
            h, whh, preferred_element_type=jnp.float32)       # (B, 4H)
        h, c = apply_gates(gates, c)

    # (4) Final Linear(H, 1) as a lane reduction (avoids an N=1 MXU matmul).
    out_ref[...] = (jnp.sum(h * wfc_ref[...], axis=-1, keepdims=True)
                    + bfc_ref[...])


def price_prediction_forward(x, params):
    """x: (B, T, D) float32 -> (B, 1) float32."""
    B, T, D = x.shape
    H = params["weight_hh"].shape[1]  # weight_hh: (4H, H)

    # Layout-only prep in the wrapper (no compute moved out of the kernel).
    x2d = jnp.transpose(x, (1, 0, 2)).reshape(T * B, D)       # time-major, flat
    wih = jnp.transpose(params["weight_ih"], (1, 0))          # (D, 4H)
    whh = jnp.transpose(params["weight_hh"], (1, 0))          # (H, 4H)
    b = (params["bias_ih"] + params["bias_hh"]).reshape(1, 4 * H)
    wfc = params["fc_weight"].reshape(1, H)                   # (1, H) row
    bfc = params["fc_bias"].reshape(1, 1)

    vmem = pltpu.MemorySpace.VMEM
    return pl.pallas_call(
        lstm_fc_kernel,
        out_shape=jax.ShapeDtypeStruct((B, 1), jnp.float32),
        in_specs=[pl.BlockSpec(memory_space=vmem)] * 6,       # everything resident
        out_specs=pl.BlockSpec(memory_space=vmem),
    )(x2d, wih, whh, b, wfc, bfc)


def reference_forward(x, params):
    """Pure-JAX reference implementing PyTorch nn.LSTM + Linear semantics."""
    B, T, D = x.shape
    H = params["weight_hh"].shape[1]
    wih = params["weight_ih"]   # (4H, D)
    whh = params["weight_hh"]   # (4H, H)
    b = params["bias_ih"] + params["bias_hh"]

    def step(carry, x_t):
        h, c = carry
        gates = x_t @ wih.T + h @ whh.T + b
        i = jax.nn.sigmoid(gates[:, 0 * H:1 * H])
        f = jax.nn.sigmoid(gates[:, 1 * H:2 * H])
        g = jnp.tanh(gates[:, 2 * H:3 * H])
        o = jax.nn.sigmoid(gates[:, 3 * H:4 * H])
        c_new = f * c + i * g
        h_new = o * jnp.tanh(c_new)
        return (h_new, c_new), None

    h0 = jnp.zeros((B, H), jnp.float32)
    c0 = jnp.zeros((B, H), jnp.float32)
    (h_last, _), _ = jax.lax.scan(step, (h0, c0), jnp.transpose(x, (1, 0, 2)))
    return h_last @ params["fc_weight"].T + params["fc_bias"]


def init_params(key, input_size, hidden_size):
    """Deterministic init mimicking PyTorch LSTM/Linear uniform(-1/sqrt(H), 1/sqrt(H))."""
    ks = jax.random.split(key, 6)
    bound = 1.0 / jnp.sqrt(jnp.float32(hidden_size))
    u = lambda k, shape: jax.random.uniform(k, shape, jnp.float32, -bound, bound)
    return {
        "weight_ih": u(ks[0], (4 * hidden_size, input_size)),
        "weight_hh": u(ks[1], (4 * hidden_size, hidden_size)),
        "bias_ih": u(ks[2], (4 * hidden_size,)),
        "bias_hh": u(ks[3], (4 * hidden_size,)),
        "fc_weight": u(ks[4], (1, hidden_size)),
        "fc_bias": u(ks[5], (1,)),
    }


if __name__ == "__main__":
    B, T, D, H = 2, 8, 4, 32   # batch, seq, input_size, hidden_size

    key = jax.random.PRNGKey(0)
    k_x, k_p = jax.random.split(key)
    x = jax.random.normal(k_x, (B, T, D), jnp.float32)
    params = init_params(k_p, D, H)

    out = price_prediction_forward(x, params)
    out = jax.block_until_ready(out)

    ref = reference_forward(x, params)
    assert out.shape == (B, 1)
    assert jnp.allclose(out, ref, atol=1e-5, rtol=1e-5), (out, ref)

    print("KERNEL_OK")
</pallas_src>

<mosaic_0001>
module attributes {stable_mosaic.version = 11 : i64} {
  func.func @lstm_fc_kernel(%arg0: memref<16x4xf32, #tpu.memory_space<vmem>>, %arg1: memref<4x128xf32, #tpu.memory_space<vmem>>, %arg2: memref<32x128xf32, #tpu.memory_space<vmem>>, %arg3: memref<1x128xf32, #tpu.memory_space<vmem>>, %arg4: memref<1x32xf32, #tpu.memory_space<vmem>>, %arg5: memref<1x1xf32, #tpu.memory_space<vmem>>, %arg6: memref<2x1xf32, #tpu.memory_space<vmem>>) attributes {dimension_semantics = [], scalar_prefetch = 0 : i64, scratch_operands = 0 : i64, tpu.core_type = #tpu.core_type<tc>} {
    %c0 = arith.constant 0 : index
    %c0_0 = arith.constant 0 : index
    %0 = vector.load %arg0[%c0, %c0_0] : memref<16x4xf32, #tpu.memory_space<vmem>>, vector<16x4xf32>
    %c0_1 = arith.constant 0 : index
    %c0_2 = arith.constant 0 : index
    %1 = vector.load %arg1[%c0_1, %c0_2] : memref<4x128xf32, #tpu.memory_space<vmem>>, vector<4x128xf32>
    %cst = arith.constant dense<0.000000e+00> : vector<16x128xf32>
    %2 = tpu.matmul %0, %1, %cst {dimension_numbers = #tpu.dot_dimension_numbers<[1], [0], [0], [1], [0, 0, 1, 1], [], []>} : vector<16x4xf32>, vector<4x128xf32>, vector<16x128xf32> -> vector<16x128xf32>
    %c0_3 = arith.constant 0 : index
    %c0_4 = arith.constant 0 : index
    %3 = vector.load %arg3[%c0_3, %c0_4] : memref<1x128xf32, #tpu.memory_space<vmem>>, vector<1x128xf32>
    %4 = vector.broadcast %3 : vector<1x128xf32> to vector<16x128xf32>
    %5 = arith.addf %2, %4 : vector<16x128xf32>
    %c0_5 = arith.constant 0 : index
    %c0_6 = arith.constant 0 : index
    %6 = vector.load %arg2[%c0_5, %c0_6] : memref<32x128xf32, #tpu.memory_space<vmem>>, vector<32x128xf32>
    %7 = vector.extract_strided_slice %5 {offsets = [0, 0], sizes = [2, 128], strides = [1, 1]} : vector<16x128xf32> to vector<2x128xf32>
    %8 = arith.negf %7 : vector<2x128xf32>
    %9 = math.exp %8 : vector<2x128xf32>
    %cst_7 = arith.constant 1.000000e+00 : f32
    %10 = vector.broadcast %cst_7 : f32 to vector<2x128xf32>
    %11 = arith.addf %10, %9 : vector<2x128xf32>
    %12 = arith.divf %10, %11 : vector<2x128xf32>
    %13 = vector.extract_strided_slice %12 {offsets = [0, 0], sizes = [2, 32], strides = [1, 1]} : vector<2x128xf32> to vector<2x32xf32>
    %14 = vector.extract_strided_slice %12 {offsets = [0, 96], sizes = [2, 32], strides = [1, 1]} : vector<2x128xf32> to vector<2x32xf32>
    %15 = vector.extract_strided_slice %7 {offsets = [0, 64], sizes = [2, 32], strides = [1, 1]} : vector<2x128xf32> to vector<2x32xf32>
    %16 = math.tanh %15 : vector<2x32xf32>
    %17 = arith.mulf %13, %16 : vector<2x32xf32>
    %18 = math.tanh %17 : vector<2x32xf32>
    %19 = arith.mulf %14, %18 : vector<2x32xf32>
    %20 = vector.extract_strided_slice %5 {offsets = [2, 0], sizes = [2, 128], strides = [1, 1]} : vector<16x128xf32> to vector<2x128xf32>
    %cst_8 = arith.constant dense<0.000000e+00> : vector<2x128xf32>
    %21 = tpu.matmul %19, %6, %cst_8 {dimension_numbers = #tpu.dot_dimension_numbers<[1], [0], [0], [1], [0, 0, 1, 1], [], []>} : vector<2x32xf32>, vector<32x128xf32>, vector<2x128xf32> -> vector<2x128xf32>
    %22 = arith.addf %20, %21 : vector<2x128xf32>
    %23 = arith.negf %22 : vector<2x128xf32>
    %24 = math.exp %23 : vector<2x128xf32>
    %cst_9 = arith.constant 1.000000e+00 : f32
    %25 = vector.broadcast %cst_9 : f32 to vector<2x128xf32>
    %26 = arith.addf %25, %24 : vector<2x128xf32>
    %27 = arith.divf %25, %26 : vector<2x128xf32>
    %28 = vector.extract_strided_slice %27 {offsets = [0, 0], sizes = [2, 32], strides = [1, 1]} : vector<2x128xf32> to vector<2x32xf32>
    %29 = vector.extract_strided_slice %27 {offsets = [0, 32], sizes = [2, 32], strides = [1, 1]} : vector<2x128xf32> to vector<2x32xf32>
    %30 = vector.extract_strided_slice %27 {offsets = [0, 96], sizes = [2, 32], strides = [1, 1]} : vector<2x128xf32> to vector<2x32xf32>
    %31 = vector.extract_strided_slice %22 {offsets = [0, 64], sizes = [2, 32], strides = [1, 1]} : vector<2x128xf32> to vector<2x32xf32>
    %32 = math.tanh %31 : vector<2x32xf32>
    %33 = arith.mulf %29, %17 : vector<2x32xf32>
    %34 = arith.mulf %28, %32 : vector<2x32xf32>
    %35 = arith.addf %33, %34 : vector<2x32xf32>
    %36 = math.tanh %35 : vector<2x32xf32>
    %37 = arith.mulf %30, %36 : vector<2x32xf32>
    %38 = vector.extract_strided_slice %5 {offsets = [4, 0], sizes = [2, 128], strides = [1, 1]} : vector<16x128xf32> to vector<2x128xf32>
    %cst_10 = arith.constant dense<0.000000e+00> : vector<2x128xf32>
    %39 = tpu.matmul %37, %6, %cst_10 {dimension_numbers = #tpu.dot_dimension_numbers<[1], [0], [0], [1], [0, 0, 1, 1], [], []>} : vector<2x32xf32>, vector<32x128xf32>, vector<2x128xf32> -> vector<2x128xf32>
    %40 = arith.addf %38, %39 : vector<2x128xf32>
    %41 = arith.negf %40 : vector<2x128xf32>
    %42 = math.exp %41 : vector<2x128xf32>
    %cst_11 = arith.constant 1.000000e+00 : f32
    %43 = vector.broadcast %cst_11 : f32 to vector<2x128xf32>
    %44 = arith.addf %43, %42 : vector<2x128xf32>
    %45 = arith.divf %43, %44 : vector<2x128xf32>
    %46 = vector.extract_strided_slice %45 {offsets = [0, 0], sizes = [2, 32], strides = [1, 1]} : vector<2x128xf32> to vector<2x32xf32>
    %47 = vector.extract_strided_slice %45 {offsets = [0, 32], sizes = [2, 32], strides = [1, 1]} : vector<2x128xf32> to vector<2x32xf32>
    %48 = vector.extract_strided_slice %45 {offsets = [0, 96], sizes = [2, 32], strides = [1, 1]} : vector<2x128xf32> to vector<2x32xf32>
    %49 = vector.extract_strided_slice %40 {offsets = [0, 64], sizes = [2, 32], strides = [1, 1]} : vector<2x128xf32> to vector<2x32xf32>
    %50 = math.tanh %49 : vector<2x32xf32>
    %51 = arith.mulf %47, %35 : vector<2x32xf32>
    %52 = arith.mulf %46, %50 : vector<2x32xf32>
    %53 = arith.addf %51, %52 : vector<2x32xf32>
    %54 = math.tanh %53 : vector<2x32xf32>
    %55 = arith.mulf %48, %54 : vector<2x32xf32>
    %56 = vector.extract_strided_slice %5 {offsets = [6, 0], sizes = [2, 128], strides = [1, 1]} : vector<16x128xf32> to vector<2x128xf32>
    %cst_12 = arith.constant dense<0.000000e+00> : vector<2x128xf32>
    %57 = tpu.matmul %55, %6, %cst_12 {dimension_numbers = #tpu.dot_dimension_numbers<[1], [0], [0], [1], [0, 0, 1, 1], [], []>} : vector<2x32xf32>, vector<32x128xf32>, vector<2x128xf32> -> vector<2x128xf32>
    %58 = arith.addf %56, %57 : vector<2x128xf32>
    %59 = arith.negf %58 : vector<2x128xf32>
    %60 = math.exp %59 : vector<2x128xf32>
    %cst_13 = arith.constant 1.000000e+00 : f32
    %61 = vector.broadcast %cst_13 : f32 to vector<2x128xf32>
    %62 = arith.addf %61, %60 : vector<2x128xf32>
    %63 = arith.divf %61, %62 : vector<2x128xf32>
    %64 = vector.extract_strided_slice %63 {offsets = [0, 0], sizes = [2, 32], strides = [1, 1]} : vector<2x128xf32> to vector<2x32xf32>
    %65 = vector.extract_strided_slice %63 {offsets = [0, 32], sizes = [2, 32], strides = [1, 1]} : vector<2x128xf32> to vector<2x32xf32>
    %66 = vector.extract_strided_slice %63 {offsets = [0, 96], sizes = [2, 32], strides = [1, 1]} : vector<2x128xf32> to vector<2x32xf32>
    %67 = vector.extract_strided_slice %58 {offsets = [0, 64], sizes = [2, 32], strides = [1, 1]} : vector<2x128xf32> to vector<2x32xf32>
    %68 = math.tanh %67 : vector<2x32xf32>
    %69 = arith.mulf %65, %53 : vector<2x32xf32>
    %70 = arith.mulf %64, %68 : vector<2x32xf32>
    %71 = arith.addf %69, %70 : vector<2x32xf32>
    %72 = math.tanh %71 : vector<2x32xf32>
    %73 = arith.mulf %66, %72 : vector<2x32xf32>
    %74 = vector.extract_strided_slice %5 {offsets = [8, 0], sizes = [2, 128], strides = [1, 1]} : vector<16x128xf32> to vector<2x128xf32>
    %cst_14 = arith.constant dense<0.000000e+00> : vector<2x128xf32>
    %75 = tpu.matmul %73, %6, %cst_14 {dimension_numbers = #tpu.dot_dimension_numbers<[1], [0], [0], [1], [0, 0, 1, 1], [], []>} : vector<2x32xf32>, vector<32x128xf32>, vector<2x128xf32> -> vector<2x128xf32>
    %76 = arith.addf %74, %75 : vector<2x128xf32>
    %77 = arith.negf %76 : vector<2x128xf32>
    %78 = math.exp %77 : vector<2x128xf32>
    %cst_15 = arith.constant 1.000000e+00 : f32
    %79 = vector.broadcast %cst_15 : f32 to vector<2x128xf32>
    %80 = arith.addf %79, %78 : vector<2x128xf32>
    %81 = arith.divf %79, %80 : vector<2x128xf32>
    %82 = vector.extract_strided_slice %81 {offsets = [0, 0], sizes = [2, 32], strides = [1, 1]} : vector<2x128xf32> to vector<2x32xf32>
    %83 = vector.extract_strided_slice %81 {offsets = [0, 32], sizes = [2, 32], strides = [1, 1]} : vector<2x128xf32> to vector<2x32xf32>
    %84 = vector.extract_strided_slice %81 {offsets = [0, 96], sizes = [2, 32], strides = [1, 1]} : vector<2x128xf32> to vector<2x32xf32>
    %85 = vector.extract_strided_slice %76 {offsets = [0, 64], sizes = [2, 32], strides = [1, 1]} : vector<2x128xf32> to vector<2x32xf32>
    %86 = math.tanh %85 : vector<2x32xf32>
    %87 = arith.mulf %83, %71 : vector<2x32xf32>
    %88 = arith.mulf %82, %86 : vector<2x32xf32>
    %89 = arith.addf %87, %88 : vector<2x32xf32>
    %90 = math.tanh %89 : vector<2x32xf32>
    %91 = arith.mulf %84, %90 : vector<2x32xf32>
    %92 = vector.extract_strided_slice %5 {offsets = [10, 0], sizes = [2, 128], strides = [1, 1]} : vector<16x128xf32> to vector<2x128xf32>
    %cst_16 = arith.constant dense<0.000000e+00> : vector<2x128xf32>
    %93 = tpu.matmul %91, %6, %cst_16 {dimension_numbers = #tpu.dot_dimension_numbers<[1], [0], [0], [1], [0, 0, 1, 1], [], []>} : vector<2x32xf32>, vector<32x128xf32>, vector<2x128xf32> -> vector<2x128xf32>
    %94 = arith.addf %92, %93 : vector<2x128xf32>
    %95 = arith.negf %94 : vector<2x128xf32>
    %96 = math.exp %95 : vector<2x128xf32>
    %cst_17 = arith.constant 1.000000e+00 : f32
    %97 = vector.broadcast %cst_17 : f32 to vector<2x128xf32>
    %98 = arith.addf %97, %96 : vector<2x128xf32>
    %99 = arith.divf %97, %98 : vector<2x128xf32>
    %100 = vector.extract_strided_slice %99 {offsets = [0, 0], sizes = [2, 32], strides = [1, 1]} : vector<2x128xf32> to vector<2x32xf32>
    %101 = vector.extract_strided_slice %99 {offsets = [0, 32], sizes = [2, 32], strides = [1, 1]} : vector<2x128xf32> to vector<2x32xf32>
    %102 = vector.extract_strided_slice %99 {offsets = [0, 96], sizes = [2, 32], strides = [1, 1]} : vector<2x128xf32> to vector<2x32xf32>
    %103 = vector.extract_strided_slice %94 {offsets = [0, 64], sizes = [2, 32], strides = [1, 1]} : vector<2x128xf32> to vector<2x32xf32>
    %104 = math.tanh %103 : vector<2x32xf32>
    %105 = arith.mulf %101, %89 : vector<2x32xf32>
    %106 = arith.mulf %100, %104 : vector<2x32xf32>
    %107 = arith.addf %105, %106 : vector<2x32xf32>
    %108 = math.tanh %107 : vector<2x32xf32>
    %109 = arith.mulf %102, %108 : vector<2x32xf32>
    %110 = vector.extract_strided_slice %5 {offsets = [12, 0], sizes = [2, 128], strides = [1, 1]} : vector<16x128xf32> to vector<2x128xf32>
    %cst_18 = arith.constant dense<0.000000e+00> : vector<2x128xf32>
    %111 = tpu.matmul %109, %6, %cst_18 {dimension_numbers = #tpu.dot_dimension_numbers<[1], [0], [0], [1], [0, 0, 1, 1], [], []>} : vector<2x32xf32>, vector<32x128xf32>, vector<2x128xf32> -> vector<2x128xf32>
    %112 = arith.addf %110, %111 : vector<2x128xf32>
    %113 = arith.negf %112 : vector<2x128xf32>
    %114 = math.exp %113 : vector<2x128xf32>
    %cst_19 = arith.constant 1.000000e+00 : f32
    %115 = vector.broadcast %cst_19 : f32 to vector<2x128xf32>
    %116 = arith.addf %115, %114 : vector<2x128xf32>
    %117 = arith.divf %115, %116 : vector<2x128xf32>
    %118 = vector.extract_strided_slice %117 {offsets = [0, 0], sizes = [2, 32], strides = [1, 1]} : vector<2x128xf32> to vector<2x32xf32>
    %119 = vector.extract_strided_slice %117 {offsets = [0, 32], sizes = [2, 32], strides = [1, 1]} : vector<2x128xf32> to vector<2x32xf32>
    %120 = vector.extract_strided_slice %117 {offsets = [0, 96], sizes = [2, 32], strides = [1, 1]} : vector<2x128xf32> to vector<2x32xf32>
    %121 = vector.extract_strided_slice %112 {offsets = [0, 64], sizes = [2, 32], strides = [1, 1]} : vector<2x128xf32> to vector<2x32xf32>
    %122 = math.tanh %121 : vector<2x32xf32>
    %123 = arith.mulf %119, %107 : vector<2x32xf32>
    %124 = arith.mulf %118, %122 : vector<2x32xf32>
    %125 = arith.addf %123, %124 : vector<2x32xf32>
    %126 = math.tanh %125 : vector<2x32xf32>
    %127 = arith.mulf %120, %126 : vector<2x32xf32>
    %128 = vector.extract_strided_slice %5 {offsets = [14, 0], sizes = [2, 128], strides = [1, 1]} : vector<16x128xf32> to vector<2x128xf32>
    %cst_20 = arith.constant dense<0.000000e+00> : vector<2x128xf32>
    %129 = tpu.matmul %127, %6, %cst_20 {dimension_numbers = #tpu.dot_dimension_numbers<[1], [0], [0], [1], [0, 0, 1, 1], [], []>} : vector<2x32xf32>, vector<32x128xf32>, vector<2x128xf32> -> vector<2x128xf32>
    %130 = arith.addf %128, %129 : vector<2x128xf32>
    %131 = arith.negf %130 : vector<2x128xf32>
    %132 = math.exp %131 : vector<2x128xf32>
    %cst_21 = arith.constant 1.000000e+00 : f32
    %133 = vector.broadcast %cst_21 : f32 to vector<2x128xf32>
    %134 = arith.addf %133, %132 : vector<2x128xf32>
    %135 = arith.divf %133, %134 : vector<2x128xf32>
    %136 = vector.extract_strided_slice %135 {offsets = [0, 0], sizes = [2, 32], strides = [1, 1]} : vector<2x128xf32> to vector<2x32xf32>
    %137 = vector.extract_strided_slice %135 {offsets = [0, 32], sizes = [2, 32], strides = [1, 1]} : vector<2x128xf32> to vector<2x32xf32>
    %138 = vector.extract_strided_slice %135 {offsets = [0, 96], sizes = [2, 32], strides = [1, 1]} : vector<2x128xf32> to vector<2x32xf32>
    %139 = vector.extract_strided_slice %130 {offsets = [0, 64], sizes = [2, 32], strides = [1, 1]} : vector<2x128xf32> to vector<2x32xf32>
    %140 = math.tanh %139 : vector<2x32xf32>
    %141 = arith.mulf %137, %125 : vector<2x32xf32>
    %142 = arith.mulf %136, %140 : vector<2x32xf32>
    %143 = arith.addf %141, %142 : vector<2x32xf32>
    %144 = math.tanh %143 : vector<2x32xf32>
    %145 = arith.mulf %138, %144 : vector<2x32xf32>
    %c0_22 = arith.constant 0 : index
    %c0_23 = arith.constant 0 : index
    %146 = vector.load %arg4[%c0_22, %c0_23] : memref<1x32xf32, #tpu.memory_space<vmem>>, vector<1x32xf32>
    %147 = vector.broadcast %146 : vector<1x32xf32> to vector<2x32xf32>
    %148 = arith.mulf %145, %147 : vector<2x32xf32>
    %cst_24 = arith.constant dense<0.000000e+00> : vector<2xf32>
    %149 = vector.multi_reduction <add>, %148, %cst_24 [1] : vector<2x32xf32> to vector<2xf32>
    %150 = vector.shape_cast %149 : vector<2xf32> to vector<2x1xf32>
    %c0_25 = arith.constant 0 : index
    %c0_26 = arith.constant 0 : index
    %151 = vector.load %arg5[%c0_25, %c0_26] : memref<1x1xf32, #tpu.memory_space<vmem>>, vector<1x1xf32>
    %152 = vector.broadcast %151 : vector<1x1xf32> to vector<2x1xf32>
    %153 = arith.addf %150, %152 : vector<2x1xf32>
    %c0_27 = arith.constant 0 : index
    %c0_28 = arith.constant 0 : index
    %154 = vector.load %arg6[%c0_27, %c0_28] : memref<2x1xf32, #tpu.memory_space<vmem>>, vector<2x1xf32>
    tpu.vector_store %arg6[%c0_27, %c0_28], %153 {strides = array<i32>} : memref<2x1xf32, #tpu.memory_space<vmem>>, vector<2x1xf32>,
    return
  }
}

</mosaic_0001>

<bundles_post_ra>
// kernel: tpu_custom_call.1
= control target key start
LH: loop header
LB: loop body
LE: loop exit
PB: predicated region body
PF: predicated region fallthrough
CT: control target
= control target key end

     0   :  { %s873_s0 = inlined_call_operand.vmem [shape: f32[16,4], index: 0, kind: input, shape index: {}]   ;;  %s874_s1 = inlined_call_operand.vmem [shape: f32[4,128], index: 1, kind: input, shape index: {}]   ;;  %s875_s2 = inlined_call_operand.hbm [shape: f32[32,128], index: 2, kind: input, shape index: {}]   ;;  %s876_s3 = inlined_call_operand.vmem [shape: f32[1,128], index: 3, kind: input, shape index: {}]   ;;  %s877_s4 = inlined_call_operand.vmem [shape: f32[1,32], index: 4, kind: input, shape index: {}]   ;;  %s878_s5 = inlined_call_operand.<no memory space> [shape: f32[1,1], index: 5, kind: input, shape index: {}]   ;;  %s879_s6 = inlined_call_operand.vmem [shape: f32[2,1], index: 6, kind: output, shape index: {}]  }
   0x1   :  { %v11_v0 = vstv %s878_s5 }
   0x2   :  { %12 = vst [vmem:[#allocation2] sm:$0x1] %v11_v0 }
   0x3   :  { %13 = vsyncpa [#allocation4], 0  ;;  %s22_s25 = sshll.u32 %s875_s2, 4  ;;  %s749_s26 = smov [#allocation3]   ;;  %s23_s25 = int_to_ptr.hbm [resolvable:$true] %s22_s25 }
   0x4   :  { %s24_s27 = sshll.u32 %s749_s26, 4  ;;  %s750_s28 = smov 128   ;;  %s25_s27 = int_to_ptr.vmem [resolvable:$true] %s24_s27 }
   0x5   :  { %s751_s29 = smov 8  }
   0x6   :  { %30 = dma.hbm_to_vmem [thread:$0]  %s23_s25, 512, %s25_s27, [#allocation4], %s750_s28, %s750_s28, %s751_s29  }
   0x7   :  { %747 = dma.done.wait [#allocation4], 512  }
   0x8   :  { %748 = vsyncadd [#allocation4], 4294966784  ;;  %vm55_vm0 = vcmask 1043456   ;;  %vm48_vm1 = vcmask 31744   ;;  %v43_v1 = vld [vmem:[%s874_s1] sm:$0xf] }
   0x9   :  { %v41_v2 = vld [vmem:[%s873_s0] sm:$0xff]  ;;  %632 = vmatpush.msk.msra.mxu0 %vm55_vm0, %v43_v1  ;;  %s752_s1 = smov 64   ;;  %s754_s10 = smov 96   ;;  %v84_v25 = vld [vmem:[#allocation3 + $0x10] sm:$0xff]  ;;  %v83_v26 = vld [vmem:[#allocation3 + $0x8] sm:$0xff]  ;;  %vm120_vm6 = vcmask 261120  }
   0xa   :  { %633 = vmatmul.msk.f32.vlgmr.msra.gmra.mxu0 %vm48_vm1, %v41_v2  ;;  %v806_v3 = vld [vmem:[%s876_s3] ss:$0 sm:$0xff]  ;;  %s753_s3 = smov 32   ;;  %v82_v27 = vld [vmem:[#allocation3] sm:$0xff] }
   0xb   :  { %v85_v24 = vld [vmem:[#allocation3 + $0x18] sm:$0xff] }
   0xc   :  { %135 = vmatpush.msra.mxu1 %v85_v24  ;;  %207 = vmatpush.msra.mxu2 %v85_v24 }
   0xd   :  { %277 = vmatpush.msra.mxu3 %v85_v24  ;;  %553 = vmatpush.msrb.mxu0 %v85_v24 }
   0xe   :  { %136 = vmatpush.msra.mxu1 %v84_v25  ;;  %208 = vmatpush.msra.mxu2 %v84_v25 }
   0xf   :  { %278 = vmatpush.msra.mxu3 %v84_v25  ;;  %554 = vmatpush.msrb.mxu0 %v84_v25 }
  0x10   :  { %137 = vmatpush.msra.mxu1 %v83_v26  ;;  %209 = vmatpush.msra.mxu2 %v83_v26 }
  0x11   :  { %279 = vmatpush.msra.mxu3 %v83_v26  ;;  %555 = vmatpush.msrb.mxu0 %v83_v26 }
  0x12   :  { %138 = vmatpush.msra.mxu1 %v82_v27  ;;  %210 = vmatpush.msra.mxu2 %v82_v27 }
  0x13   :  { %280 = vmatpush.msra.mxu3 %v82_v27  ;;  %556 = vmatpush.msrb.mxu0 %v82_v27 }
  0x14   :  { %347 = vmatpush.msrb.mxu1 %v85_v24  ;;  %413 = vmatpush.msrb.mxu2 %v85_v24 }
  0x15   :  { %483 = vmatpush.msrb.mxu3 %v85_v24 }
  0x16   :  { %348 = vmatpush.msrb.mxu1 %v84_v25  ;;  %414 = vmatpush.msrb.mxu2 %v84_v25 }
  0x17   :  { %484 = vmatpush.msrb.mxu3 %v84_v25 }
  0x18   :  { %349 = vmatpush.msrb.mxu1 %v83_v26  ;;  %415 = vmatpush.msrb.mxu2 %v83_v26 }
  0x19   :  { %485 = vmatpush.msrb.mxu3 %v83_v26 }
  0x1a   :  { %350 = vmatpush.msrb.mxu1 %v82_v27  ;;  %416 = vmatpush.msrb.mxu2 %v82_v27 }
  0x1b   :  { %486 = vmatpush.msrb.mxu3 %v82_v27 }
  0x87   :  { %v76_v4 = vpop.f32.mrf.mxu0 }
  0x88   :  { %v809_v5 = vadd.f32 %v806_v3, %v76_v4 }
  0x8a   :  { %659 = vtanh.f32 %v809_v5  ;;  %v635_v7 = vmul.f32 -1.442695, %v809_v5 }
  0x8c   :  { %661 = vpow2.f32 %v635_v7 }
  0x90   :  { %v660_v6 = vpop.eup %659 }
  0x91   :  { %107 = vrot.lane.b32.xlu0 %v660_v6, %s752_s1 }
  0x92   :  { %v662_v8 = vpop.eup %661 }
  0x93   :  { %v89_v9 = vadd.f32 1.0, %v662_v8 }
  0x95   :  { %663 = vrcp.f32 %v89_v9  ;;  %v101_v15 = vand.u32 2147483648, %v89_v9  ;;  %vm95_vm3 = vweird.f32 %v89_v9  ;;  %v99_v16 = vand.u32 2147483647, %v89_v9 }
  0x97   :  { %v102_v18 = vor.u32 1.1754944e-38, %v101_v15  ;;  %vm100_vm5 = vcmp.eq.f32.partialorder %v99_v16, 8.507059e+37 }
  0x9b   :  { %v664_v10 = vpop.eup %663 }
  0x9c   :  { %v91_v11 = vmul.f32 %v664_v10, %v89_v9  ;;  %vm96_vm2 = vweird.f32 %v664_v10 }
  0x9d   :  { %vm97_vm4 = vmor %vm95_vm3, %vm96_vm2 }
  0x9e   :  { %v92_v12 = vsub.f32 1.0, %v91_v11 }
  0xa0   :  { %v93_v13 = vmul.f32 %v664_v10, %v92_v12 }
  0xa2   :  { %v94_v14 = vadd.f32 %v664_v10, %v93_v13 }
  0xa4   :  { %v98_v17 = vsel %vm97_vm4, %v664_v10, %v94_v14 }
  0xa5   :  { %v103_v20 = vsel %vm100_vm5, %v102_v18, %v98_v17 }
 0x103   :  { %v108_v19 = vpop.permute.xlu0 %107 }
 0x104   :  { %v110_v21 = vmul.f32 %v108_v19, %v103_v20 }
 0x106   :  { %665 = vtanh.f32 %v110_v21  ;;  %v168_v22 = vrot.slane %v110_v21, 6 }
 0x108   :  { %169 = vrot.lane.b32.xlu2 %v168_v22, %s753_s3 }
 0x10c   :  { %v666_v23 = vpop.eup %665 }
 0x10d   :  { %113 = vrot.lane.b32.xlu0 %v666_v23, %s754_s10 }
 0x162   :  { %v170_v50 = vpop.permute.xlu2 %169 }
 0x17f   :  { %v114_v28 = vpop.permute.xlu0 %113 }
 0x180   :  { %v116_v29 = vmul.f32 %v114_v28, %v103_v20 }
 0x182   :  { %118 = vrot.lane.b32.xlu1 %v116_v29, %s753_s3 }
 0x1f4   :  { %v119_v30 = vpop.permute.xlu1 %118 }
 0x1f5   :  { %636 = vmatmul.msk.f32.vlgmr.msra.gmra.mxu1 %vm120_vm6, %v119_v30 }
 0x272   :  { %v140_v31 = vpop.f32.mrf.mxu1 }
 0x273   :  { %v144_v32 = vrot.slane %v140_v31, 6 }
 0x275   :  { %v146_v33 = vadd.f32 %v144_v32, %v809_v5 }
 0x277   :  { %667 = vtanh.f32 %v146_v33  ;;  %v637_v35 = vmul.f32 -1.442695, %v146_v33 }
 0x279   :  { %669 = vpow2.f32 %v637_v35 }
 0x27d   :  { %v668_v34 = vpop.eup %667 }
 0x27e   :  { %174 = vrot.lane.b32.xlu1 %v668_v34, %s752_s1 }
 0x27f   :  { %v670_v36 = vpop.eup %669 }
 0x280   :  { %v150_v37 = vadd.f32 1.0, %v670_v36 }
 0x282   :  { %671 = vrcp.f32 %v150_v37  ;;  %v162_v43 = vand.u32 2147483648, %v150_v37  ;;  %vm156_vm8 = vweird.f32 %v150_v37  ;;  %v160_v44 = vand.u32 2147483647, %v150_v37 }
 0x284   :  { %v163_v46 = vor.u32 1.1754944e-38, %v162_v43  ;;  %vm161_vm10 = vcmp.eq.f32.partialorder %v160_v44, 8.507059e+37 }
 0x288   :  { %v672_v38 = vpop.eup %671 }
 0x289   :  { %v152_v39 = vmul.f32 %v672_v38, %v150_v37  ;;  %vm157_vm7 = vweird.f32 %v672_v38 }
 0x28a   :  { %vm158_vm9 = vmor %vm156_vm8, %vm157_vm7 }
 0x28b   :  { %v153_v40 = vsub.f32 1.0, %v152_v39 }
 0x28d   :  { %v154_v41 = vmul.f32 %v672_v38, %v153_v40 }
 0x28f   :  { %v155_v42 = vadd.f32 %v672_v38, %v154_v41 }
 0x291   :  { %v159_v45 = vsel %vm158_vm9, %v672_v38, %v155_v42 }
 0x292   :  { %v164_v48 = vsel %vm161_vm10, %v163_v46, %v159_v45 }
 0x293   :  { %v172_v51 = vmul.f32 %v170_v50, %v164_v48 }
 0x2f0   :  { %v175_v47 = vpop.permute.xlu1 %174 }
 0x2f1   :  { %v177_v49 = vmul.f32 %v175_v47, %v164_v48 }
 0x2f3   :  { %179 = vrot.lane.b32.xlu2 %v177_v49, %s753_s3 }
 0x34d   :  { %v180_v52 = vpop.permute.xlu2 %179 }
 0x34e   :  { %v182_v53 = vadd.f32 %v180_v52, %v172_v51 }
 0x350   :  { %673 = vtanh.f32 %v182_v53  ;;  %v240_v16 = vrot.slane %v182_v53, 6 }
 0x356   :  { %v674_v54 = vpop.eup %673 }
 0x357   :  { %185 = vrot.lane.b32.xlu0 %v674_v54, %s752_s1 }
 0x3c9   :  { %v186_v55 = vpop.permute.xlu0 %185 }
 0x3ca   :  { %v188_v56 = vmul.f32 %v186_v55, %v164_v48  ;;  %v42_v48 = vld [vmem:[%s873_s0 + $0x8] sm:$0xff] }
 0x3cb   :  { %634 = vmatmul.msk.f32.gmra.mxu0 %vm48_vm1, %v42_v48 }
 0x3cc   :  { %v190_v57 = vrot.slane %v188_v56, 2 }
 0x3ce   :  { %191 = vrot.lane.b32.xlu1 %v190_v57, %s753_s3 }
 0x440   :  { %v192_v58 = vpop.permute.xlu1 %191 }
 0x441   :  { %638 = vmatmul.msk.f32.vlgmr.msra.gmra.mxu2 %vm120_vm6, %v192_v58 }
 0x448   :  { %v79_v53 = vpop.f32.mrf.mxu0 }
 0x449   :  { %v841_v54 = vadd.f32 %v806_v3, %v79_v53 }
 0x4c4   :  { %v212_v59 = vpop.f32.mrf.mxu2 }
 0x4c5   :  { %v216_v60 = vrot.slane %v212_v59, 4 }
 0x4c7   :  { %v218_v61 = vadd.f32 %v216_v60, %v809_v5 }
 0x4c9   :  { %675 = vtanh.f32 %v218_v61  ;;  %v639_v63 = vmul.f32 -1.442695, %v218_v61 }
 0x4cb   :  { %677 = vpow2.f32 %v639_v63 }
 0x4cf   :  { %v676_v62 = vpop.eup %675 }
 0x4d0   :  { %244 = vrot.lane.b32.xlu2 %v676_v62, %s752_s1 }
 0x4d1   :  { %v678_v0 = vpop.eup %677 }
 0x4d2   :  { %v222_v1 = vadd.f32 1.0, %v678_v0 }
 0x4d4   :  { %679 = vrcp.f32 %v222_v1  ;;  %v234_v9 = vand.u32 2147483648, %v222_v1  ;;  %vm228_vm12 = vweird.f32 %v222_v1  ;;  %v232_v10 = vand.u32 2147483647, %v222_v1 }
 0x4d6   :  { %v235_v12 = vor.u32 1.1754944e-38, %v234_v9  ;;  %vm233_vm14 = vcmp.eq.f32.partialorder %v232_v10, 8.507059e+37 }
 0x4da   :  { %v680_v2 = vpop.eup %679 }
 0x4db   :  { %v224_v4 = vmul.f32 %v680_v2, %v222_v1  ;;  %vm229_vm11 = vweird.f32 %v680_v2 }
 0x4dc   :  { %vm230_vm13 = vmor %vm228_vm12, %vm229_vm11 }
 0x4dd   :  { %v225_v6 = vsub.f32 1.0, %v224_v4 }
 0x4df   :  { %v226_v7 = vmul.f32 %v680_v2, %v225_v6 }
 0x4e1   :  { %v227_v8 = vadd.f32 %v680_v2, %v226_v7 }
 0x4e3   :  { %v231_v11 = vsel %vm230_vm13, %v680_v2, %v227_v8 }
 0x4e4   :  { %v236_v14 = vsel %vm233_vm14, %v235_v12, %v231_v11 }
 0x4e5   :  { %v242_v17 = vmul.f32 %v240_v16, %v236_v14 }
 0x52a   :  { %v245_v13 = vpop.permute.xlu2 %244 }
 0x52b   :  { %v247_v15 = vmul.f32 %v245_v13, %v236_v14 }
 0x52d   :  { %249 = vrot.lane.b32.xlu0 %v247_v15, %s753_s3 }
 0x59f   :  { %v250_v18 = vpop.permute.xlu0 %249 }
 0x5a0   :  { %v252_v19 = vadd.f32 %v250_v18, %v242_v17 }
 0x5a2   :  { %681 = vtanh.f32 %v252_v19  ;;  %v310_v43 = vrot.slane %v252_v19, 6 }
 0x5a8   :  { %v682_v20 = vpop.eup %681 }
 0x5a9   :  { %255 = vrot.lane.b32.xlu1 %v682_v20, %s752_s1 }
 0x61b   :  { %v256_v21 = vpop.permute.xlu1 %255 }
 0x61c   :  { %v258_v22 = vmul.f32 %v256_v21, %v236_v14 }
 0x61e   :  { %v260_v23 = vrot.slane %v258_v22, 4 }
 0x620   :  { %261 = vrot.lane.b32.xlu2 %v260_v23, %s753_s3 }
 0x67a   :  { %v262_v24 = vpop.permute.xlu2 %261 }
 0x67b   :  { %640 = vmatmul.msk.f32.vlgmr.msra.gmra.mxu3 %vm120_vm6, %v262_v24 }
 0x6fe   :  { %v282_v25 = vpop.f32.mrf.mxu3 }
 0x6ff   :  { %v286_v26 = vrot.slane %v282_v25, 2 }
 0x701   :  { %v288_v27 = vadd.f32 %v286_v26, %v809_v5 }
 0x703   :  { %683 = vtanh.f32 %v288_v27  ;;  %v641_v29 = vmul.f32 -1.442695, %v288_v27 }
 0x705   :  { %685 = vpow2.f32 %v641_v29 }
 0x709   :  { %v684_v28 = vpop.eup %683 }
 0x70a   :  { %314 = vrot.lane.b32.xlu0 %v684_v28, %s752_s1 }
 0x70b   :  { %v686_v30 = vpop.eup %685 }
 0x70c   :  { %v292_v31 = vadd.f32 1.0, %v686_v30 }
 0x70e   :  { %687 = vrcp.f32 %v292_v31  ;;  %v304_v37 = vand.u32 2147483648, %v292_v31  ;;  %vm298_vm0 = vweird.f32 %v292_v31  ;;  %v302_v38 = vand.u32 2147483647, %v292_v31 }
 0x710   :  { %v305_v39 = vor.u32 1.1754944e-38, %v304_v37  ;;  %vm303_vm3 = vcmp.eq.f32.partialorder %v302_v38, 8.507059e+37 }
 0x714   :  { %v688_v32 = vpop.eup %687 }
 0x715   :  { %v294_v33 = vmul.f32 %v688_v32, %v292_v31  ;;  %vm299_vm15 = vweird.f32 %v688_v32 }
 0x716   :  { %vm300_vm2 = vmor %vm298_vm0, %vm299_vm15 }
 0x717   :  { %v295_v34 = vsub.f32 1.0, %v294_v33 }
 0x719   :  { %v296_v35 = vmul.f32 %v688_v32, %v295_v34 }
 0x71b   :  { %v297_v36 = vadd.f32 %v688_v32, %v296_v35 }
 0x71d   :  { %v301_v5 = vsel %vm300_vm2, %v688_v32, %v297_v36 }
 0x71e   :  { %v306_v41 = vsel %vm303_vm3, %v305_v39, %v301_v5 }
 0x71f   :  { %v312_v44 = vmul.f32 %v310_v43, %v306_v41 }
 0x77c   :  { %v315_v40 = vpop.permute.xlu0 %314 }
 0x77d   :  { %v317_v42 = vmul.f32 %v315_v40, %v306_v41 }
 0x77f   :  { %319 = vrot.lane.b32.xlu1 %v317_v42, %s753_s3 }
 0x7f1   :  { %v320_v45 = vpop.permute.xlu1 %319 }
 0x7f2   :  { %v322_v46 = vadd.f32 %v320_v45, %v312_v44 }
 0x7f4   :  { %689 = vtanh.f32 %v322_v46  ;;  %v377_v10 = vrot.slane %v322_v46, 6 }
 0x7fa   :  { %v690_v47 = vpop.eup %689 }
 0x7fb   :  { %325 = vrot.lane.b32.xlu2 %v690_v47, %s752_s1 }
 0x855   :  { %v326_v49 = vpop.permute.xlu2 %325 }
 0x856   :  { %v328_v50 = vmul.f32 %v326_v49, %v306_v41 }
 0x858   :  { %v330_v51 = vrot.slane %v328_v50, 6 }
 0x85a   :  { %331 = vrot.lane.b32.xlu0 %v330_v51, %s753_s3 }
 0x8cc   :  { %v332_v52 = vpop.permute.xlu0 %331 }
 0x8cd   :  { %642 = vmatmul.msk.f32.vlgmr.msrb.gmra.mxu1 %vm120_vm6, %v332_v52 }
 0x94a   :  { %v352_v55 = vpop.f32.mrf.mxu1 }
 0x94b   :  { %v355_v56 = vadd.f32 %v352_v55, %v841_v54 }
 0x94d   :  { %691 = vtanh.f32 %v355_v56  ;;  %v643_v58 = vmul.f32 -1.442695, %v355_v56 }
 0x94f   :  { %693 = vpow2.f32 %v643_v58 }
 0x953   :  { %v692_v57 = vpop.eup %691 }
 0x954   :  { %381 = vrot.lane.b32.xlu1 %v692_v57, %s752_s1 }
 0x955   :  { %v694_v59 = vpop.eup %693 }
 0x956   :  { %v359_v60 = vadd.f32 1.0, %v694_v59 }
 0x958   :  { %695 = vrcp.f32 %v359_v60  ;;  %v371_v3 = vand.u32 2147483648, %v359_v60  ;;  %vm365_vm4 = vweird.f32 %v359_v60  ;;  %v369_v2 = vand.u32 2147483647, %v359_v60 }
 0x95a   :  { %v372_v6 = vor.u32 1.1754944e-38, %v371_v3  ;;  %vm370_vm7 = vcmp.eq.f32.partialorder %v369_v2, 8.507059e+37 }
 0x95e   :  { %v696_v61 = vpop.eup %695 }
 0x95f   :  { %v361_v62 = vmul.f32 %v696_v61, %v359_v60  ;;  %vm366_vm1 = vweird.f32 %v696_v61 }
 0x960   :  { %vm367_vm5 = vmor %vm365_vm4, %vm366_vm1  ;;  %vm616_vm1 = vcmask 261126   ;;  %vm625_vm4 = vcmask 7174  }
 0x961   :  { %v362_v63 = vsub.f32 1.0, %v361_v62 }
 0x963   :  { %v363_v0 = vmul.f32 %v696_v61, %v362_v63 }
 0x965   :  { %v364_v1 = vadd.f32 %v696_v61, %v363_v0 }
 0x967   :  { %v368_v4 = vsel %vm367_vm5, %v696_v61, %v364_v1 }
 0x968   :  { %v373_v8 = vsel %vm370_vm7, %v372_v6, %v368_v4 }
 0x969   :  { %v379_v11 = vmul.f32 %v377_v10, %v373_v8 }
 0x9c6   :  { %v382_v7 = vpop.permute.xlu1 %381 }
 0x9c7   :  { %v384_v9 = vmul.f32 %v382_v7, %v373_v8 }
 0x9c9   :  { %386 = vrot.lane.b32.xlu2 %v384_v9, %s753_s3 }
 0xa23   :  { %v387_v12 = vpop.permute.xlu2 %386 }
 0xa24   :  { %v389_v13 = vadd.f32 %v387_v12, %v379_v11 }
 0xa26   :  { %697 = vtanh.f32 %v389_v13  ;;  %v446_v37 = vrot.slane %v389_v13, 6 }
 0xa2c   :  { %v698_v14 = vpop.eup %697 }
 0xa2d   :  { %392 = vrot.lane.b32.xlu0 %v698_v14, %s752_s1 }
 0xa9f   :  { %v393_v15 = vpop.permute.xlu0 %392 }
 0xaa0   :  { %v395_v16 = vmul.f32 %v393_v15, %v373_v8 }
 0xaa2   :  { %397 = vrot.lane.b32.xlu1 %v395_v16, %s753_s3 }
 0xb14   :  { %v398_v17 = vpop.permute.xlu1 %397 }
 0xb15   :  { %644 = vmatmul.msk.f32.vlgmr.msrb.gmra.mxu2 %vm120_vm6, %v398_v17 }
 0xb98   :  { %v418_v18 = vpop.f32.mrf.mxu2 }
 0xb99   :  { %v422_v19 = vrot.slane %v418_v18, 6 }
 0xb9b   :  { %v424_v20 = vadd.f32 %v422_v19, %v841_v54 }
 0xb9d   :  { %699 = vtanh.f32 %v424_v20  ;;  %v645_v22 = vmul.f32 -1.442695, %v424_v20 }
 0xb9f   :  { %701 = vpow2.f32 %v645_v22 }
 0xba3   :  { %v700_v21 = vpop.eup %699 }
 0xba4   :  { %450 = vrot.lane.b32.xlu2 %v700_v21, %s752_s1 }
 0xba5   :  { %v702_v23 = vpop.eup %701 }
 0xba6   :  { %v428_v24 = vadd.f32 1.0, %v702_v23 }
 0xba8   :  { %703 = vrcp.f32 %v428_v24  ;;  %v440_v30 = vand.u32 2147483648, %v428_v24  ;;  %vm434_vm9 = vweird.f32 %v428_v24  ;;  %v438_v31 = vand.u32 2147483647, %v428_v24 }
 0xbaa   :  { %v441_v33 = vor.u32 1.1754944e-38, %v440_v30  ;;  %vm439_vm11 = vcmp.eq.f32.partialorder %v438_v31, 8.507059e+37 }
 0xbae   :  { %v704_v25 = vpop.eup %703 }
 0xbaf   :  { %v430_v26 = vmul.f32 %v704_v25, %v428_v24  ;;  %vm435_vm8 = vweird.f32 %v704_v25 }
 0xbb0   :  { %vm436_vm10 = vmor %vm434_vm9, %vm435_vm8 }
 0xbb1   :  { %v431_v27 = vsub.f32 1.0, %v430_v26 }
 0xbb3   :  { %v432_v28 = vmul.f32 %v704_v25, %v431_v27 }
 0xbb5   :  { %v433_v29 = vadd.f32 %v704_v25, %v432_v28 }
 0xbb7   :  { %v437_v32 = vsel %vm436_vm10, %v704_v25, %v433_v29  ;;  %v657_v29 = vld [vmem:[%s877_s4] ss:$0 sm:$0xff] }
 0xbb8   :  { %v442_v35 = vsel %vm439_vm11, %v441_v33, %v437_v32 }
 0xbb9   :  { %v448_v38 = vmul.f32 %v446_v37, %v442_v35 }
 0xbfe   :  { %v451_v34 = vpop.permute.xlu2 %450 }
 0xbff   :  { %v453_v36 = vmul.f32 %v451_v34, %v442_v35 }
 0xc01   :  { %455 = vrot.lane.b32.xlu0 %v453_v36, %s753_s3 }
 0xc73   :  { %v456_v5 = vpop.permute.xlu0 %455 }
 0xc74   :  { %v458_v39 = vadd.f32 %v456_v5, %v448_v38 }
 0xc76   :  { %705 = vtanh.f32 %v458_v39  ;;  %v516_v1 = vrot.slane %v458_v39, 6 }
 0xc7c   :  { %v706_v40 = vpop.eup %705 }
 0xc7d   :  { %461 = vrot.lane.b32.xlu1 %v706_v40, %s752_s1  ;;  %v658_v40 = vld [vmem:[#allocation2] ss:$0 sm:$0xff] }
 0xcef   :  { %v462_v41 = vpop.permute.xlu1 %461 }
 0xcf0   :  { %v464_v42 = vmul.f32 %v462_v41, %v442_v35 }
 0xcf2   :  { %v466_v43 = vrot.slane %v464_v42, 2 }
 0xcf4   :  { %467 = vrot.lane.b32.xlu2 %v466_v43, %s753_s3 }
 0xd4e   :  { %v468_v44 = vpop.permute.xlu2 %467 }
 0xd4f   :  { %646 = vmatmul.msk.f32.vlgmr.msrb.gmra.mxu3 %vm120_vm6, %v468_v44 }
 0xdd2   :  { %v488_v45 = vpop.f32.mrf.mxu3 }
 0xdd3   :  { %v492_v46 = vrot.slane %v488_v45, 4 }
 0xdd5   :  { %v494_v47 = vadd.f32 %v492_v46, %v841_v54 }
 0xdd7   :  { %707 = vtanh.f32 %v494_v47  ;;  %v647_v49 = vmul.f32 -1.442695, %v494_v47 }
 0xdd9   :  { %709 = vpow2.f32 %v647_v49 }
 0xddd   :  { %v708_v48 = vpop.eup %707 }
 0xdde   :  { %520 = vrot.lane.b32.xlu0 %v708_v48, %s752_s1 }
 0xddf   :  { %v710_v50 = vpop.eup %709 }
 0xde0   :  { %v498_v51 = vadd.f32 1.0, %v710_v50 }
 0xde2   :  { %711 = vrcp.f32 %v498_v51  ;;  %v510_v58 = vand.u32 2147483648, %v498_v51  ;;  %vm504_vm13 = vweird.f32 %v498_v51  ;;  %v508_v59 = vand.u32 2147483647, %v498_v51 }
 0xde4   :  { %v511_v61 = vor.u32 1.1754944e-38, %v510_v58  ;;  %vm509_vm15 = vcmp.eq.f32.partialorder %v508_v59, 8.507059e+37 }
 0xde8   :  { %v712_v52 = vpop.eup %711 }
 0xde9   :  { %v500_v53 = vmul.f32 %v712_v52, %v498_v51  ;;  %vm505_vm12 = vweird.f32 %v712_v52 }
 0xdea   :  { %vm506_vm14 = vmor %vm504_vm13, %vm505_vm12 }
 0xdeb   :  { %v501_v55 = vsub.f32 1.0, %v500_v53 }
 0xded   :  { %v502_v56 = vmul.f32 %v712_v52, %v501_v55 }
 0xdef   :  { %v503_v57 = vadd.f32 %v712_v52, %v502_v56 }
 0xdf1   :  { %v507_v60 = vsel %vm506_vm14, %v712_v52, %v503_v57 }
 0xdf2   :  { %v512_v63 = vsel %vm509_vm15, %v511_v61, %v507_v60 }
 0xdf3   :  { %v518_v3 = vmul.f32 %v516_v1, %v512_v63 }
 0xe50   :  { %v521_v62 = vpop.permute.xlu0 %520 }
 0xe51   :  { %v523_v0 = vmul.f32 %v521_v62, %v512_v63 }
 0xe53   :  { %525 = vrot.lane.b32.xlu1 %v523_v0, %s753_s3 }
 0xec5   :  { %v526_v2 = vpop.permute.xlu1 %525 }
 0xec6   :  { %v528_v4 = vadd.f32 %v526_v2, %v518_v3 }
 0xec8   :  { %713 = vtanh.f32 %v528_v4  ;;  %v586_v30 = vrot.slane %v528_v4, 6 }
 0xece   :  { %v714_v6 = vpop.eup %713 }
 0xecf   :  { %531 = vrot.lane.b32.xlu2 %v714_v6, %s752_s1 }
 0xf29   :  { %v532_v7 = vpop.permute.xlu2 %531 }
 0xf2a   :  { %v534_v8 = vmul.f32 %v532_v7, %v512_v63 }
 0xf2c   :  { %v536_v9 = vrot.slane %v534_v8, 4 }
 0xf2e   :  { %537 = vrot.lane.b32.xlu0 %v536_v9, %s753_s3 }
 0xfa0   :  { %v538_v10 = vpop.permute.xlu0 %537 }
 0xfa1   :  { %648 = vmatmul.msk.f32.vlgmr.msrb.gmra.mxu0 %vm120_vm6, %v538_v10 }
0x101e   :  { %v558_v11 = vpop.f32.mrf.mxu0 }
0x101f   :  { %v562_v12 = vrot.slane %v558_v11, 2 }
0x1021   :  { %v564_v13 = vadd.f32 %v562_v12, %v841_v54 }
0x1023   :  { %715 = vtanh.f32 %v564_v13  ;;  %v649_v15 = vmul.f32 -1.442695, %v564_v13 }
0x1025   :  { %717 = vpow2.f32 %v649_v15 }
0x1029   :  { %v716_v14 = vpop.eup %715 }
0x102a   :  { %590 = vrot.lane.b32.xlu1 %v716_v14, %s752_s1 }
0x102b   :  { %v718_v16 = vpop.eup %717 }
0x102c   :  { %v568_v17 = vadd.f32 1.0, %v718_v16 }
0x102e   :  { %719 = vrcp.f32 %v568_v17  ;;  %v580_v23 = vand.u32 2147483648, %v568_v17  ;;  %vm574_vm6 = vweird.f32 %v568_v17  ;;  %v578_v24 = vand.u32 2147483647, %v568_v17 }
0x1030   :  { %v581_v25 = vor.u32 1.1754944e-38, %v580_v23  ;;  %vm579_vm3 = vcmp.eq.f32.partialorder %v578_v24, 8.507059e+37 }
0x1032   :  { %608 = vrot.lane.b32.xlu1 %v657_v29, %s754_s10 }
0x1034   :  { %v720_v18 = vpop.eup %719 }
0x1035   :  { %v570_v19 = vmul.f32 %v720_v18, %v568_v17  ;;  %vm575_vm0 = vweird.f32 %v720_v18 }
0x1036   :  { %vm576_vm2 = vmor %vm574_vm6, %vm575_vm0 }
0x1037   :  { %v571_v20 = vsub.f32 1.0, %v570_v19 }
0x1039   :  { %v572_v21 = vmul.f32 %v720_v18, %v571_v20 }
0x103b   :  { %v573_v22 = vadd.f32 %v720_v18, %v572_v21 }
0x103d   :  { %v577_v54 = vsel %vm576_vm2, %v720_v18, %v573_v22 }
0x103e   :  { %v582_v27 = vsel %vm579_vm3, %v581_v25, %v577_v54 }
0x103f   :  { %v588_v31 = vmul.f32 %v586_v30, %v582_v27 }
0x109c   :  { %v591_v26 = vpop.permute.xlu1 %590 }
0x109d   :  { %v593_v28 = vmul.f32 %v591_v26, %v582_v27 }
0x109f   :  { %595 = vrot.lane.b32.xlu2 %v593_v28, %s753_s3 }
0x10a4   :  { %v609_v36 = vpop.permute.xlu1 %608 }
0x10f9   :  { %v596_v32 = vpop.permute.xlu2 %595 }
0x10fa   :  { %v598_v33 = vadd.f32 %v596_v32, %v588_v31 }
0x10fc   :  { %721 = vtanh.f32 %v598_v33 }
0x1102   :  { %v722_v34 = vpop.eup %721 }
0x1103   :  { %601 = vrot.lane.b32.xlu0 %v722_v34, %s752_s1 }
0x1175   :  { %v602_v35 = vpop.permute.xlu0 %601 }
0x1176   :  { %v604_v37 = vmul.f32 %v602_v35, %v582_v27 }
0x1178   :  { %v611_v38 = vmul.f32 %v609_v36, %v604_v37 }
0x117a   :  { %613 = vrot.lane.b32.xlu2 %v611_v38, %s753_s3 }
0x11d4   :  { %v614_v5 = vpop.permute.xlu2 %613 }
0x11d5   :  { %v617_v39 = vsel %vm616_vm1, %v614_v5, 0.0 }
0x11d6   :  { %618 = vadd.xlane.f32.xlu0 %v617_v39 }
0x1249   :  { %v619_v41 = vpop.xlane.xlu0 %618 }
0x124a   :  { %v624_v42 = vadd.f32 %v658_v40, %v619_v41 }
0x124c   :  { %626 = vst.msk [vmem:[%s879_s6 - $0x6] sm:$0xc0] %vm625_vm4, %v624_v42 }
0x124d   :  { %631 = vsyncpa [#allocation4], 1 }

</bundles_post_ra>
